<compile_context>
chip_gen: v5e
topology: v5e:2x2
jax: 0.10.0
libtpu: 0.0.40
codegen_flags: <defaults>
</compile_context>

<pallas_src>
import functools

import jax
import jax.numpy as jnp
from jax.experimental import pallas as pl
from jax.experimental.pallas import tpu as pltpu

LANE = 128
SUBLANE = 8
MAX_BATCH_TILE = 2048


def _round_up(x, m):
    return (x + m - 1) // m * m


def _batch_axis_semantics():
    """CORE_PARALLEL on v7x (2 TensorCores/chip), plain PARALLEL elsewhere."""
    kind = ""
    try:
        kind = jax.devices()[0].device_kind.lower()
    except Exception:
        pass
    return (pltpu.CORE_PARALLEL,) if "v7" in kind else (pltpu.PARALLEL,)


# ----------------------------------------------------------------------------
# Kernel: fused embedding "gather" (one-hot matmul) + 3-layer MLP.
# ----------------------------------------------------------------------------
def _net_kernel(idx_ref, nc_ref, temb_ref, w1nc_ref, b1_ref,
                w2_ref, b2_ref, w3_ref, b3_ref, o_ref):
    tb = nc_ref.shape[0]          # batch tile
    vp = temb_ref.shape[0]        # lane-padded total vocab
    n_cat = idx_ref.shape[1]
    cdt = temb_ref.dtype          # bf16 MXU operand dtype (f32 accumulation)

    # Combined one-hot (TB, Vp): indices already carry the per-column
    # vocabulary offsets (added in the wrapper) so segments are disjoint;
    # OR the compares and cast to the dot dtype once.
    lane = jax.lax.broadcasted_iota(jnp.int32, (tb, vp), 1)
    idx = idx_ref[...]
    hit = lane == idx[:, 0:1]
    for c in range(1, n_cat):
        hit = jnp.logical_or(hit, lane == idx[:, c:c + 1])
    onehot = hit.astype(cdt)

    # fc1 = onehot @ (folded emb->fc1 table) + non_cat @ W1_nc + b1, ReLU.
    h1 = jnp.dot(onehot, temb_ref[...], preferred_element_type=jnp.float32)
    h1 = h1 + jnp.dot(nc_ref[...].astype(cdt), w1nc_ref[...],
                      preferred_element_type=jnp.float32)
    h1 = jnp.maximum(h1 + b1_ref[...], 0.0)

    # fc2 + ReLU
    h2 = jnp.dot(h1.astype(cdt), w2_ref[...],
                 preferred_element_type=jnp.float32) + b2_ref[...]
    h2 = jnp.maximum(h2, 0.0)

    # fc3 + Sigmoid.  The weight stays lane-padded so the dot is dense; only
    # the real output columns are stored (small masked vst, unpadded HBM out).
    z = jnp.dot(h2.astype(cdt), w3_ref[...],
                preferred_element_type=jnp.float32) + b3_ref[...]
    o_ref[...] = jax.nn.sigmoid(z[:, :o_ref.shape[1]]).astype(o_ref.dtype)


# ----------------------------------------------------------------------------
# Parameter init (raw, PyTorch-equivalent) and one-time kernel-ready prep.
# ----------------------------------------------------------------------------
def init_params(key, vocab_sizes, embedding_dim, hidden_dim, output_dim):
    keys = jax.random.split(key, len(vocab_sizes) + 6)
    emb_tables = [
        jax.random.normal(keys[i], (v, embedding_dim), dtype=jnp.float32)
        for i, v in enumerate(vocab_sizes)
    ]
    k = len(vocab_sizes)

    def linear(kw, kb, fan_in, fan_out):
        bound = 1.0 / float(fan_in) ** 0.5
        w = jax.random.uniform(kw, (fan_in, fan_out), jnp.float32, -bound, bound)
        b = jax.random.uniform(kb, (fan_out,), jnp.float32, -bound, bound)
        return w, b

    w1, b1 = linear(keys[k + 0], keys[k + 1], hidden_dim, hidden_dim)
    w2, b2 = linear(keys[k + 2], keys[k + 3], hidden_dim, hidden_dim)
    w3, b3 = linear(keys[k + 4], keys[k + 5], hidden_dim, output_dim)
    return {"emb_tables": emb_tables,
            "w1": w1, "b1": b1, "w2": w2, "b2": b2, "w3": w3, "b3": b3}


def prepare_params(params, vocab_sizes, embedding_dim, num_non_cat,
                   hidden_dim, output_dim):
    """Fold embedding tables into W1, pad to lane width, cast weights to bf16."""
    n_cat = len(vocab_sizes)
    assert hidden_dim == n_cat * embedding_dim + num_non_cat
    hi = jax.lax.Precision.HIGHEST

    w1, b1 = params["w1"], params["b1"]
    w2, b2 = params["w2"], params["b2"]
    w3, b3 = params["w3"], params["b3"]

    # T_c = emb_table_c @ W1[c*d:(c+1)*d, :]  — gather(table)@W1 == onehot@T_c
    folded = [
        jnp.dot(params["emb_tables"][c],
                w1[c * embedding_dim:(c + 1) * embedding_dim, :], precision=hi)
        for c in range(n_cat)
    ]
    t_emb = jnp.concatenate(folded, axis=0)                 # (V_total, hidden)
    v_total = t_emb.shape[0]

    vp = _round_up(v_total, LANE)
    hp = _round_up(hidden_dim, LANE)
    op = _round_up(output_dim, LANE)

    wdt = jnp.bfloat16   # MXU-native operand dtype; accumulation stays f32
    t_emb_p = (jnp.zeros((vp, hp), jnp.float32)
               .at[:v_total, :hidden_dim].set(t_emb)).astype(wdt)
    w1nc_p = (jnp.zeros((num_non_cat, hp), jnp.float32)
              .at[:, :hidden_dim].set(w1[n_cat * embedding_dim:, :])).astype(wdt)
    w2_p = (jnp.zeros((hp, hp), jnp.float32)
            .at[:hidden_dim, :hidden_dim].set(w2)).astype(wdt)
    w3_p = (jnp.zeros((hp, op), jnp.float32)
            .at[:hidden_dim, :output_dim].set(w3)).astype(wdt)
    b1_p = jnp.zeros((1, hp), jnp.float32).at[0, :hidden_dim].set(b1)
    b2_p = jnp.zeros((1, hp), jnp.float32).at[0, :hidden_dim].set(b2)
    b3_p = jnp.zeros((1, op), jnp.float32).at[0, :output_dim].set(b3)

    offsets, acc = [], 0
    for v in vocab_sizes:
        offsets.append(acc)
        acc += v

    return {"t_emb": t_emb_p, "w1_nc": w1nc_p, "b1": b1_p,
            "w2": w2_p, "b2": b2_p, "w3": w3_p, "b3": b3_p,
            "offsets": tuple(int(o) for o in offsets),
            "output_dim": int(output_dim)}


# ----------------------------------------------------------------------------
# Forward: single fused Pallas dispatch, batch-gridded, weights VMEM-resident.
# ----------------------------------------------------------------------------
def net_forward(prepared, cat_feature_list, non_cat_features):
    out_dim = prepared["output_dim"]
    offsets = jnp.asarray(prepared["offsets"], jnp.int32)

    nc = non_cat_features.astype(jnp.float32)
    b = nc.shape[0]
    # Pre-offset indices (one tiny (b, n_cat) add) so the kernel's one-hot
    # build is a single compare per categorical column.
    idx = jnp.stack([c.astype(jnp.int32) for c in cat_feature_list],
                    axis=1) + offsets[None, :]

    tb = min(MAX_BATCH_TILE, _round_up(b, SUBLANE))
    grid = (pl.cdiv(b, tb),)     # ragged last block is masked by Pallas

    t_emb, w1nc = prepared["t_emb"], prepared["w1_nc"]
    b1p, w2p, b2p = prepared["b1"], prepared["w2"], prepared["b2"]
    w3p, b3p = prepared["w3"], prepared["b3"]
    vp, hp = t_emb.shape
    n_nc = w1nc.shape[0]
    n_cat = idx.shape[1]
    op = w3p.shape[1]

    row = lambda i: (i, 0)       # batch-tiled operands
    const = lambda i: (0, 0)     # weights/biases stay VMEM-resident

    out = pl.pallas_call(
        _net_kernel,
        out_shape=jax.ShapeDtypeStruct((b, out_dim), jnp.float32),
        grid=grid,
        in_specs=[
            pl.BlockSpec((tb, n_cat), row),    # pre-offset categorical indices
            pl.BlockSpec((tb, n_nc), row),     # non-categorical features
            pl.BlockSpec((vp, hp), const),     # folded embedding->fc1 table
            pl.BlockSpec((n_nc, hp), const),   # fc1 weight (non-cat rows)
            pl.BlockSpec((1, hp), const),      # b1
            pl.BlockSpec((hp, hp), const),     # w2
            pl.BlockSpec((1, hp), const),      # b2
            pl.BlockSpec((hp, op), const),     # w3 (lane-padded columns)
            pl.BlockSpec((1, op), const),      # b3
        ],
        out_specs=pl.BlockSpec((tb, out_dim), row),   # unpadded output
        compiler_params=pltpu.CompilerParams(
            dimension_semantics=_batch_axis_semantics()),
    )(idx, nc, t_emb, w1nc, b1p, w2p, b2p, w3p, b3p)

    return out


# Pure-JAX reference (mirrors the PyTorch forward) for correctness checking.
def net_forward_reference(params, cat_feature_list, non_cat_features):
    hi = jax.lax.Precision.HIGHEST
    bsz = non_cat_features.shape[0]
    embedded = jnp.concatenate(
        [jnp.take(tbl, idx.astype(jnp.int32), axis=0)
         for tbl, idx in zip(params["emb_tables"], cat_feature_list)], axis=1)
    x = jnp.concatenate([embedded.reshape(bsz, -1),
                         non_cat_features.astype(jnp.float32)], axis=1)
    h = jax.nn.relu(jnp.dot(x, params["w1"], precision=hi) + params["b1"])
    h = jax.nn.relu(jnp.dot(h, params["w2"], precision=hi) + params["b2"])
    return jax.nn.sigmoid(jnp.dot(h, params["w3"], precision=hi) + params["b3"])


if __name__ == "__main__":
    # Small config consistent with the module:
    #   3 categorical columns, embedding_dim=4  -> 12 embedded features
    #   20 non-categorical features             -> hidden_dim = 12 + 20 = 32
    vocab_sizes = [10, 7, 5]
    embedding_dim = 4
    num_non_cat = 20
    hidden_dim = len(vocab_sizes) * embedding_dim + num_non_cat  # 32
    output_dim = 4
    batch = 8

    key = jax.random.PRNGKey(0)
    kp, kc, kn = jax.random.split(key, 3)

    params = init_params(kp, vocab_sizes, embedding_dim, hidden_dim, output_dim)
    prepared = prepare_params(params, vocab_sizes, embedding_dim,
                              num_non_cat, hidden_dim, output_dim)

    cat_keys = jax.random.split(kc, len(vocab_sizes))
    cat_feature_list = [
        jax.random.randint(cat_keys[i], (batch,), 0, vocab_sizes[i],
                           dtype=jnp.int32)
        for i in range(len(vocab_sizes))
    ]
    non_cat_features = jax.random.normal(kn, (batch, num_non_cat),
                                         dtype=jnp.float32)

    forward = jax.jit(functools.partial(net_forward, prepared))
    out = jax.block_until_ready(forward(cat_feature_list, non_cat_features))

    ref = net_forward_reference(params, cat_feature_list, non_cat_features)

    assert out.shape == (batch, output_dim)
    assert bool(jnp.all(jnp.isfinite(out)))
    assert bool(jnp.all((out >= 0.0) & (out <= 1.0)))
    # bf16 MXU operands with f32 accumulation: matches the f32 reference to
    # ~1e-2 on sigmoid outputs (f32-operand path matched to ~1e-3).
    assert bool(jnp.allclose(out, ref, atol=1e-2, rtol=1e-2))
    print("KERNEL_OK")
</pallas_src>

<mosaic_0001>
module attributes {stable_mosaic.version = 11 : i64} {
  func.func @_net_kernel(%arg0: i32, %arg1: memref<8x3xi32, #tpu.memory_space<vmem>>, %arg2: memref<8x20xf32, #tpu.memory_space<vmem>>, %arg3: memref<128x128xbf16, #tpu.memory_space<vmem>>, %arg4: memref<20x128xbf16, #tpu.memory_space<vmem>>, %arg5: memref<1x128xf32, #tpu.memory_space<vmem>>, %arg6: memref<128x128xbf16, #tpu.memory_space<vmem>>, %arg7: memref<1x128xf32, #tpu.memory_space<vmem>>, %arg8: memref<128x128xbf16, #tpu.memory_space<vmem>>, %arg9: memref<1x128xf32, #tpu.memory_space<vmem>>, %arg10: memref<8x4xf32, #tpu.memory_space<vmem>>) attributes {dimension_semantics = [#tpu.dimension_semantics<parallel>], iteration_bounds = array<i64: 1>, scalar_prefetch = 0 : i64, scratch_operands = 0 : i64, tpu.core_type = #tpu.core_type<tc>, window_params = [{transform_indices = @transform_0, window_bounds = array<i64: 8, 3>}, {transform_indices = @transform_1, window_bounds = array<i64: 8, 20>}, {pipeline_mode = #tpu.pipeline_mode<synchronous>, transform_indices = @transform_2, window_bounds = array<i64: 128, 128>}, {pipeline_mode = #tpu.pipeline_mode<synchronous>, transform_indices = @transform_3, window_bounds = array<i64: 20, 128>}, {pipeline_mode = #tpu.pipeline_mode<synchronous>, transform_indices = @transform_4, window_bounds = array<i64: 1, 128>}, {pipeline_mode = #tpu.pipeline_mode<synchronous>, transform_indices = @transform_5, window_bounds = array<i64: 128, 128>}, {pipeline_mode = #tpu.pipeline_mode<synchronous>, transform_indices = @transform_6, window_bounds = array<i64: 1, 128>}, {pipeline_mode = #tpu.pipeline_mode<synchronous>, transform_indices = @transform_7, window_bounds = array<i64: 128, 128>}, {pipeline_mode = #tpu.pipeline_mode<synchronous>, transform_indices = @transform_8, window_bounds = array<i64: 1, 128>}, {transform_indices = @transform_9, window_bounds = array<i64: 8, 4>}]} {
    %0 = tpu.iota {dimensions = array<i32: 1>} : vector<8x128xi32>
    %c0 = arith.constant 0 : index
    %c0_0 = arith.constant 0 : index
    %1 = vector.load %arg1[%c0, %c0_0] : memref<8x3xi32, #tpu.memory_space<vmem>>, vector<8x3xi32>
    %2 = vector.extract_strided_slice %1 {offsets = [0, 0], sizes = [8, 1], strides = [1, 1]} : vector<8x3xi32> to vector<8x1xi32>
    %3 = vector.broadcast %2 : vector<8x1xi32> to vector<8x128xi32>
    %4 = arith.cmpi eq, %0, %3 : vector<8x128xi32>
    %5 = vector.extract_strided_slice %1 {offsets = [0, 1], sizes = [8, 1], strides = [1, 1]} : vector<8x3xi32> to vector<8x1xi32>
    %6 = vector.broadcast %5 : vector<8x1xi32> to vector<8x128xi32>
    %7 = arith.cmpi eq, %0, %6 : vector<8x128xi32>
    %8 = arith.ori %4, %7 : vector<8x128xi1>
    %9 = vector.extract_strided_slice %1 {offsets = [0, 2], sizes = [8, 1], strides = [1, 1]} : vector<8x3xi32> to vector<8x1xi32>
    %10 = vector.broadcast %9 : vector<8x1xi32> to vector<8x128xi32>
    %11 = arith.cmpi eq, %0, %10 : vector<8x128xi32>
    %12 = arith.ori %8, %11 : vector<8x128xi1>
    %13 = arith.extui %12 : vector<8x128xi1> to vector<8x128xi32>
    %14 = arith.sitofp %13 : vector<8x128xi32> to vector<8x128xf32>
    %15 = arith.truncf %14 : vector<8x128xf32> to vector<8x128xbf16>
    %c0_1 = arith.constant 0 : index
    %c0_2 = arith.constant 0 : index
    %16 = vector.load %arg3[%c0_1, %c0_2] : memref<128x128xbf16, #tpu.memory_space<vmem>>, vector<128x128xbf16>
    %cst = arith.constant dense<0.000000e+00> : vector<8x128xf32>
    %17 = tpu.matmul %15, %16, %cst {dimension_numbers = #tpu.dot_dimension_numbers<[1], [0], [0], [1], [0, 0, 1, 1], [], []>} : vector<8x128xbf16>, vector<128x128xbf16>, vector<8x128xf32> -> vector<8x128xf32>
    %c0_3 = arith.constant 0 : index
    %c0_4 = arith.constant 0 : index
    %18 = vector.load %arg2[%c0_3, %c0_4] : memref<8x20xf32, #tpu.memory_space<vmem>>, vector<8x20xf32>
    %19 = arith.truncf %18 : vector<8x20xf32> to vector<8x20xbf16>
    %c0_5 = arith.constant 0 : index
    %c0_6 = arith.constant 0 : index
    %20 = vector.load %arg4[%c0_5, %c0_6] : memref<20x128xbf16, #tpu.memory_space<vmem>>, vector<20x128xbf16>
    %cst_7 = arith.constant dense<0.000000e+00> : vector<8x128xf32>
    %21 = tpu.matmul %19, %20, %cst_7 {dimension_numbers = #tpu.dot_dimension_numbers<[1], [0], [0], [1], [0, 0, 1, 1], [], []>} : vector<8x20xbf16>, vector<20x128xbf16>, vector<8x128xf32> -> vector<8x128xf32>
    %22 = arith.addf %17, %21 : vector<8x128xf32>
    %c0_8 = arith.constant 0 : index
    %c0_9 = arith.constant 0 : index
    %23 = vector.load %arg5[%c0_8, %c0_9] : memref<1x128xf32, #tpu.memory_space<vmem>>, vector<1x128xf32>
    %24 = vector.broadcast %23 : vector<1x128xf32> to vector<8x128xf32>
    %25 = arith.addf %22, %24 : vector<8x128xf32>
    %cst_10 = arith.constant 0.000000e+00 : f32
    %26 = vector.broadcast %cst_10 : f32 to vector<8x128xf32>
    %27 = arith.maximumf %25, %26 : vector<8x128xf32>
    %28 = arith.truncf %27 : vector<8x128xf32> to vector<8x128xbf16>
    %c0_11 = arith.constant 0 : index
    %c0_12 = arith.constant 0 : index
    %29 = vector.load %arg6[%c0_11, %c0_12] : memref<128x128xbf16, #tpu.memory_space<vmem>>, vector<128x128xbf16>
    %cst_13 = arith.constant dense<0.000000e+00> : vector<8x128xf32>
    %30 = tpu.matmul %28, %29, %cst_13 {dimension_numbers = #tpu.dot_dimension_numbers<[1], [0], [0], [1], [0, 0, 1, 1], [], []>} : vector<8x128xbf16>, vector<128x128xbf16>, vector<8x128xf32> -> vector<8x128xf32>
    %c0_14 = arith.constant 0 : index
    %c0_15 = arith.constant 0 : index
    %31 = vector.load %arg7[%c0_14, %c0_15] : memref<1x128xf32, #tpu.memory_space<vmem>>, vector<1x128xf32>
    %32 = vector.broadcast %31 : vector<1x128xf32> to vector<8x128xf32>
    %33 = arith.addf %30, %32 : vector<8x128xf32>
    %cst_16 = arith.constant 0.000000e+00 : f32
    %34 = vector.broadcast %cst_16 : f32 to vector<8x128xf32>
    %35 = arith.maximumf %33, %34 : vector<8x128xf32>
    %36 = arith.truncf %35 : vector<8x128xf32> to vector<8x128xbf16>
    %c0_17 = arith.constant 0 : index
    %c0_18 = arith.constant 0 : index
    %37 = vector.load %arg8[%c0_17, %c0_18] : memref<128x128xbf16, #tpu.memory_space<vmem>>, vector<128x128xbf16>
    %cst_19 = arith.constant dense<0.000000e+00> : vector<8x128xf32>
    %38 = tpu.matmul %36, %37, %cst_19 {dimension_numbers = #tpu.dot_dimension_numbers<[1], [0], [0], [1], [0, 0, 1, 1], [], []>} : vector<8x128xbf16>, vector<128x128xbf16>, vector<8x128xf32> -> vector<8x128xf32>
    %c0_20 = arith.constant 0 : index
    %c0_21 = arith.constant 0 : index
    %39 = vector.load %arg9[%c0_20, %c0_21] : memref<1x128xf32, #tpu.memory_space<vmem>>, vector<1x128xf32>
    %40 = vector.broadcast %39 : vector<1x128xf32> to vector<8x128xf32>
    %41 = arith.addf %38, %40 : vector<8x128xf32>
    %42 = vector.extract_strided_slice %41 {offsets = [0, 0], sizes = [8, 4], strides = [1, 1]} : vector<8x128xf32> to vector<8x4xf32>
    %43 = arith.negf %42 : vector<8x4xf32>
    %44 = math.exp %43 : vector<8x4xf32>
    %cst_22 = arith.constant 1.000000e+00 : f32
    %45 = vector.broadcast %cst_22 : f32 to vector<8x4xf32>
    %46 = arith.addf %45, %44 : vector<8x4xf32>
    %47 = arith.divf %45, %46 : vector<8x4xf32>
    %c0_23 = arith.constant 0 : index
    %c0_24 = arith.constant 0 : index
    %48 = vector.load %arg10[%c0_23, %c0_24] : memref<8x4xf32, #tpu.memory_space<vmem>>, vector<8x4xf32>
    tpu.vector_store %arg10[%c0_23, %c0_24], %47 {strides = array<i32>} : memref<8x4xf32, #tpu.memory_space<vmem>>, vector<8x4xf32>,
    return
  }
  func.func @transform_0(%arg0: i32) -> (i32, i32) {
    %c0_i32 = arith.constant 0 : i32
    %c0_i32_0 = arith.constant 0 : i32
    return %arg0, %c0_i32 : i32, i32
  }
  func.func @transform_1(%arg0: i32) -> (i32, i32) {
    %c0_i32 = arith.constant 0 : i32
    %c0_i32_0 = arith.constant 0 : i32
    return %arg0, %c0_i32 : i32, i32
  }
  func.func @transform_2(%arg0: i32) -> (i32, i32) {
    %c0_i32 = arith.constant 0 : i32
    %c0_i32_0 = arith.constant 0 : i32
    %c0_i32_1 = arith.constant 0 : i32
    return %c0_i32, %c0_i32_0 : i32, i32
  }
  func.func @transform_3(%arg0: i32) -> (i32, i32) {
    %c0_i32 = arith.constant 0 : i32
    %c0_i32_0 = arith.constant 0 : i32
    %c0_i32_1 = arith.constant 0 : i32
    return %c0_i32, %c0_i32_0 : i32, i32
  }
  func.func @transform_4(%arg0: i32) -> (i32, i32) {
    %c0_i32 = arith.constant 0 : i32
    %c0_i32_0 = arith.constant 0 : i32
    %c0_i32_1 = arith.constant 0 : i32
    return %c0_i32, %c0_i32_0 : i32, i32
  }
  func.func @transform_5(%arg0: i32) -> (i32, i32) {
    %c0_i32 = arith.constant 0 : i32
    %c0_i32_0 = arith.constant 0 : i32
    %c0_i32_1 = arith.constant 0 : i32
    return %c0_i32, %c0_i32_0 : i32, i32
  }
  func.func @transform_6(%arg0: i32) -> (i32, i32) {
    %c0_i32 = arith.constant 0 : i32
    %c0_i32_0 = arith.constant 0 : i32
    %c0_i32_1 = arith.constant 0 : i32
    return %c0_i32, %c0_i32_0 : i32, i32
  }
  func.func @transform_7(%arg0: i32) -> (i32, i32) {
    %c0_i32 = arith.constant 0 : i32
    %c0_i32_0 = arith.constant 0 : i32
    %c0_i32_1 = arith.constant 0 : i32
    return %c0_i32, %c0_i32_0 : i32, i32
  }
  func.func @transform_8(%arg0: i32) -> (i32, i32) {
    %c0_i32 = arith.constant 0 : i32
    %c0_i32_0 = arith.constant 0 : i32
    %c0_i32_1 = arith.constant 0 : i32
    return %c0_i32, %c0_i32_0 : i32, i32
  }
  func.func @transform_9(%arg0: i32) -> (i32, i32) {
    %c0_i32 = arith.constant 0 : i32
    %c0_i32_0 = arith.constant 0 : i32
    return %arg0, %c0_i32 : i32, i32
  }
}

</mosaic_0001>

<bundles_post_ra>
// kernel: net_forward.1
= control target key start
LH: loop header
LB: loop body
LE: loop exit
PB: predicated region body
PF: predicated region fallthrough
CT: control target
= control target key end

     0   :  { %14 = vsyncpa [#allocation3], 0  ;;  %s728_s0 = inlined_call_operand.vmem [shape: s32[8,3], index: 0, kind: input, shape index: {}]   ;;  %s729_s1 = inlined_call_operand.vmem [shape: f32[8,20], index: 1, kind: input, shape index: {}]   ;;  %s730_s2 = inlined_call_operand.hbm [shape: bf16[128,128], index: 2, kind: input, shape index: {}]   ;;  %s731_s3 = inlined_call_operand.vmem [shape: bf16[20,128], index: 3, kind: input, shape index: {}]   ;;  %s732_s4 = inlined_call_operand.vmem [shape: f32[1,128], index: 4, kind: input, shape index: {}]   ;;  %s733_s5 = inlined_call_operand.hbm [shape: bf16[128,128], index: 5, kind: input, shape index: {}]   ;;  %s734_s6 = inlined_call_operand.vmem [shape: f32[1,128], index: 6, kind: input, shape index: {}]   ;;  %s735_s7 = inlined_call_operand.hbm [shape: bf16[128,128], index: 7, kind: input, shape index: {}]   ;;  %s736_s8 = inlined_call_operand.vmem [shape: f32[1,128], index: 8, kind: input, shape index: {}]   ;;  %s737_s9 = inlined_call_operand.vmem [shape: f32[8,4], index: 9, kind: output, shape index: {}]  }
   0x1   :  { %15 = vsyncpa [#allocation5], 0  ;;  %s41_s11 = sshll.u32 %s733_s5, 4  ;;  %s636_s12 = smov [#allocation4]   ;;  %s42_s11 = int_to_ptr.hbm [resolvable:$true] %s41_s11 }
   0x2   :  { %s43_s13 = sshll.u32 %s636_s12, 4  ;;  %s24_s16 = sshll.u32 %s730_s2, 4  ;;  %s44_s13 = int_to_ptr.vmem [resolvable:$true] %s43_s13  ;;  %s25_s16 = int_to_ptr.hbm [resolvable:$true] %s24_s16 }
   0x3   :  { %s637_s17 = smov 64   ;;  %s638_s18 = smov 4  }
   0x4   :  { %49 = dma.hbm_to_vmem [thread:$0]  %s42_s11, 1024, %s44_s13, [#allocation5], %s637_s17, %s637_s17, %s638_s18  }
   0x5   :  { %s639_s19 = smov [#allocation2]   ;;  %s56_s23 = sshll.u32 %s735_s7, 4  ;;  %s57_s23 = int_to_ptr.hbm [resolvable:$true] %s56_s23 }
   0x6   :  { %s26_s20 = sshll.u32 %s639_s19, 4  ;;  %s640_s5 = smov [#allocation6]   ;;  %s27_s20 = int_to_ptr.vmem [resolvable:$true] %s26_s20 }
   0x7   :  { %32 = dma.hbm_to_vmem [thread:$0]  %s25_s16, 1024, %s27_s20, [#allocation3], %s637_s17, %s637_s17, %s638_s18  }
   0x8   :  { %s58_s24 = sshll.u32 %s640_s5, 4  ;;  %s59_s24 = int_to_ptr.vmem [resolvable:$true] %s58_s24 }
   0x9   :  { %64 = dma.hbm_to_vmem [thread:$0]  %s57_s23, 1024, %s59_s24, [#allocation5], %s637_s17, %s637_s17, %s638_s18  }
   0xa   :  { %632 = dma.done.wait [#allocation3], 1024  }
   0xb   :  { %633 = vsyncadd [#allocation3], 4294966272 }
   0xc   :  { %634 = dma.done.wait [#allocation5], 2048  }
   0xd   :  { %635 = vsyncadd [#allocation5], 4294965248  ;;  %v641_v0 = vmov 0   ;;  %v642_v1 = vmov 2   ;;  %v82_v2 = vld [vmem:[%s728_s0] sm:$0xff]  ;;  %v522_v3 = vld [vmem:[#allocation2 + $0x38] sm:$0xff]  ;;  %v80_v24 = vlaneseq }
   0xe   :  { %549 = vset.pattern.permute.xlu0 %v641_v0  ;;  %551 = vset.pattern.permute.xlu1 %v642_v1  ;;  %v120_v4 = vld [vmem:[%s731_s3 + $0x8] sm:$0x3]  ;;  %v521_v5 = vld [vmem:[#allocation2 + $0x30] sm:$0xff]  ;;  %vm134_vm0 = vcmask 1041408   ;;  %v643_v10 = vmov 1   ;;  %v519_v11 = vld [vmem:[#allocation2 + $0x20] sm:$0xff] }
   0xf   :  { %84 = vperm.xlu0 %549, %v82_v2   ;;  %93 = vperm.xlu1 %551, %v82_v2   ;;  %v126_v6 = vunpack.c.l.b16 %v120_v4  ;;  %v520_v8 = vld [vmem:[#allocation2 + $0x28] sm:$0xff]  ;;  %v518_v12 = vld [vmem:[#allocation2 + $0x18] sm:$0xff]  ;;  %v523_v13 = vld [vmem:[%s731_s3] sm:$0xff]  ;;  %vm130_vm1 = vcmask 162816   ;;  %v81_v25 = vand.u32 127, %v80_v24  ;;  %vm402_vm11 = vcmask 31744  }
  0x10   :  { %199 = vmatpush.bf16.msra.mxu1 %v522_v3  ;;  %v517_v14 = vld [vmem:[#allocation2 + $0x10] sm:$0xff]  ;;  %v116_v15 = vld [vmem:[%s729_s1] sm:$0xff]  ;;  %v516_v17 = vld [vmem:[#allocation2 + $0x8] sm:$0xff]  ;;  %v644_v28 = vmov 1.0|1.0  }
  0x11   :  { %v128_v7 = vpack.c.b16 %v126_v6, %v126_v6  ;;  %v117_v16 = vpack.c.bf16 %v116_v15, %v116_v15  ;;  %v515_v18 = vld [vmem:[#allocation2] sm:$0xff]  ;;  %v531_v19 = vld [vmem:[#allocation4 + $0x38] sm:$0xff]  ;;  %v530_v20 = vld [vmem:[#allocation4 + $0x30] sm:$0xff] }
  0x12   :  { %287 = vmatpush.bf16.msra.mxu2 %v531_v19  ;;  %v529_v21 = vld [vmem:[#allocation4 + $0x28] sm:$0xff]  ;;  %v528_v22 = vld [vmem:[#allocation4 + $0x20] sm:$0xff]  ;;  %v527_v29 = vld [vmem:[#allocation4 + $0x18] sm:$0xff] }
  0x13   :  { %v136_v9 = vsel %vm134_vm0, %v128_v7, 0  ;;  %v526_v30 = vld [vmem:[#allocation4 + $0x10] sm:$0xff]  ;;  %v525_v33 = vld [vmem:[#allocation4 + $0x8] sm:$0xff]  ;;  %v524_v34 = vld [vmem:[#allocation4] sm:$0xff] }
  0x14   :  { %200 = vmatpush.bf16.msra.mxu1 %v521_v5  ;;  %144 = vmatpush.bf16.msra.mxu0 %v136_v9  ;;  %v539_v35 = vld [vmem:[#allocation6 + $0x38] sm:$0xff]  ;;  %v538_v36 = vld [vmem:[#allocation6 + $0x30] sm:$0xff]  ;;  %v537_v37 = vld [vmem:[#allocation6 + $0x28] sm:$0xff] }
  0x15   :  { %370 = vmatpush.bf16.msra.mxu3 %v539_v35  ;;  %v536_v38 = vld [vmem:[#allocation6 + $0x20] sm:$0xff]  ;;  %v535_v39 = vld [vmem:[#allocation6 + $0x18] sm:$0xff]  ;;  %v534_v40 = vld [vmem:[#allocation6 + $0x10] sm:$0xff] }
  0x16   :  { %288 = vmatpush.bf16.msra.mxu2 %v530_v20  ;;  %v553_v41 = vld [vmem:[%s732_s4] ss:$0 sm:$0xff]  ;;  %v533_v48 = vld [vmem:[#allocation6 + $0x8] sm:$0xff] }
  0x17   :  { %550 = vset.pattern.permute.xlu0 %v643_v10  ;;  %v532_v49 = vld [vmem:[#allocation6] sm:$0xff] }
  0x18   :  { %88 = vperm.xlu0 %550, %v82_v2   ;;  %201 = vmatpush.bf16.msra.mxu1 %v520_v8  ;;  %v554_v50 = vld [vmem:[%s734_s6] ss:$0 sm:$0xff] }
  0x19   :  { %145 = vmatpush.bf16.msra.mxu0 %v523_v13  ;;  %371 = vmatpush.bf16.msra.mxu3 %v538_v36  ;;  %v555_v56 = vld [vmem:[%s736_s8] ss:$0 sm:$0xff] }
  0x1a   :  { %289 = vmatpush.bf16.msra.mxu2 %v529_v21 }
  0x1c   :  { %202 = vmatpush.bf16.msra.mxu1 %v519_v11  ;;  %415 = vmatmul.msk.bf16.vlgmr.msra.gmra.mxu0 %vm130_vm1, %v117_v16 }
  0x1d   :  { %372 = vmatpush.bf16.msra.mxu3 %v537_v37 }
  0x1e   :  { %290 = vmatpush.bf16.msra.mxu2 %v528_v22 }
  0x20   :  { %203 = vmatpush.bf16.msra.mxu1 %v518_v12  ;;  %552 = vset.pattern.permute.xlu0 %v642_v1 }
  0x21   :  { %373 = vmatpush.bf16.msra.mxu3 %v536_v38 }
  0x22   :  { %291 = vmatpush.bf16.msra.mxu2 %v527_v29 }
  0x24   :  { %204 = vmatpush.bf16.msra.mxu1 %v517_v14 }
  0x25   :  { %374 = vmatpush.bf16.msra.mxu3 %v535_v39 }
  0x26   :  { %292 = vmatpush.bf16.msra.mxu2 %v526_v30 }
  0x28   :  { %205 = vmatpush.bf16.msra.mxu1 %v516_v17 }
  0x29   :  { %375 = vmatpush.bf16.msra.mxu3 %v534_v40 }
  0x2a   :  { %293 = vmatpush.bf16.msra.mxu2 %v525_v33 }
  0x2c   :  { %206 = vmatpush.bf16.msra.mxu1 %v515_v18 }
  0x2d   :  { %376 = vmatpush.bf16.msra.mxu3 %v533_v48 }
  0x2e   :  { %294 = vmatpush.bf16.msra.mxu2 %v524_v34 }
  0x31   :  { %377 = vmatpush.bf16.msra.mxu3 %v532_v49 }
  0x81   :  { %v85_v23 = vpop.permute.xlu0 %84  ;;  %v94_v26 = vpop.permute.xlu1 %93 }
  0x82   :  { %vm95_vm2 = vcmp.eq.s32.totalorder %v81_v25, %v94_v26  ;;  %vm86_vm3 = vcmp.eq.s32.totalorder %v81_v25, %v85_v23 }
  0x8a   :  { %v89_v27 = vpop.permute.xlu0 %88 }
  0x8b   :  { %vm90_vm4 = vcmp.eq.s32.totalorder %v81_v25, %v89_v27 }
  0x8c   :  { %vm91_vm5 = vmor %vm86_vm3, %vm90_vm4 }
  0x8d   :  { %vm96_vm6 = vmor %vm91_vm5, %vm95_vm2 }
  0x8e   :  { %vm448_vm7 = vmpackc.low %vm96_vm6, %vm96_vm6 }
  0x8f   :  { %449 = vmatmul.msk.bf16.vlgmr.msra.gmra.mxu1 %vm448_vm7, %v644_v28 }
  0x99   :  { %v147_v31 = vpop.f32.mrf.mxu0 }
  0xa1   :  { %v149_v32 = vpop.f32.mrf.mxu0 }
 0x10c   :  { %v208_v42 = vpop.f32.mrf.mxu1 }
 0x10d   :  { %v209_v43 = vadd.f32 %v208_v42, %v147_v31 }
 0x10f   :  { %v216_v44 = vadd.f32 %v553_v41, %v209_v43 }
 0x111   :  { %v217_v45 = vmax.f32 %v216_v44, 0.0 }
 0x113   :  { %v218_v46 = vpack.c.bf16 %v217_v45, %v217_v45 }
 0x114   :  { %v210_v47 = vpop.f32.mrf.mxu1 }
 0x115   :  { %295 = vmatmul.bf16.vlgmr.msra.gmra.mxu2 %v218_v46 }
 0x198   :  { %v296_v51 = vpop.f32.mrf.mxu2 }
 0x199   :  { %v297_v52 = vadd.f32 %v554_v50, %v296_v51 }
 0x19b   :  { %v300_v53 = vmax.f32 %v297_v52, 0.0 }
 0x19d   :  { %v301_v54 = vpack.c.bf16 %v300_v53, %v300_v53 }
 0x19f   :  { %378 = vmatmul.bf16.vlgmr.msra.gmra.mxu3 %v301_v54 }
 0x1a0   :  { %v298_v55 = vpop.f32.mrf.mxu2 }
 0x222   :  { %v379_v57 = vpop.f32.mrf.mxu3 }
 0x223   :  { %v380_v58 = vadd.f32 %v555_v56, %v379_v57 }
 0x225   :  { %v514_v59 = vmul.f32 -1.442695, %v380_v58 }
 0x227   :  { %556 = vpow2.f32 %v514_v59 }
 0x22a   :  { %v381_v60 = vpop.f32.mrf.mxu3 }
 0x22d   :  { %v557_v61 = vpop.eup %556 }
 0x22e   :  { %v386_v62 = vadd.f32 1.0, %v557_v61 }
 0x230   :  { %558 = vrcp.f32 %v386_v62  ;;  %v398_v2 = vand.u32 2147483648, %v386_v62  ;;  %v396_v4 = vand.u32 2147483647, %v386_v62  ;;  %vm392_vm9 = vweird.f32 %v386_v62 }
 0x232   :  { %v399_v6 = vor.u32 1.1754944e-38, %v398_v2  ;;  %vm397_vm12 = vcmp.eq.f32.partialorder %v396_v4, 8.507059e+37 }
 0x236   :  { %v559_v63 = vpop.eup %558 }
 0x237   :  { %v388_v0 = vmul.f32 %v559_v63, %v386_v62  ;;  %vm393_vm8 = vweird.f32 %v559_v63 }
 0x238   :  { %vm394_vm10 = vmor %vm392_vm9, %vm393_vm8 }
 0x239   :  { %v389_v1 = vsub.f32 1.0, %v388_v0 }
 0x23b   :  { %v390_v3 = vmul.f32 %v559_v63, %v389_v1 }
 0x23d   :  { %v391_v5 = vadd.f32 %v559_v63, %v390_v3 }
 0x23f   :  { %v395_v7 = vsel %vm394_vm10, %v559_v63, %v391_v5 }
 0x240   :  { %v400_v8 = vsel %vm397_vm12, %v399_v6, %v395_v7 }
 0x241   :  { %403 = vst.msk [vmem:[%s737_s9] sm:$0xff] %vm402_vm11, %v400_v8 }
 0x242   :  { %408 = vsyncpa [#allocation3], 1 }
 0x243   :  { %409 = vsyncpa [#allocation5], 1 }

</bundles_post_ra>
